<compile_context>
chip_gen: v5e
topology: v5e:2x2
jax: 0.10.0
libtpu: 0.0.40
codegen_flags: <defaults>
</compile_context>

<pallas_src>
import math

import jax
import jax.numpy as jnp
from jax.experimental import pallas as pl
from jax.experimental.pallas import tpu as pltpu


def _round_up(x, m):
    return ((x + m - 1) // m) * m


def _sigmoid(z):
    # Numerically-stable sigmoid on the EUP (tanh); identical to 1/(1+exp(-z)).
    return 0.5 * (jnp.tanh(0.5 * z) + 1.0)


def mtad_gat_kernel(gat_ref, wih_ref, whh_ref, small_ref, hout_ref, xflat_ref):
    """Whole MTAD_GAT forward in one grid-less invocation.

    gat_ref   : (p0 + 2F + 3, 2F) packed GAT slab
                  rows [0:N)        a_both = [data_r | data_tr]        (N, 2F)
                  rows [p0:p0+2F)   W_blk  = blockdiag(Wf^T, Wt^T)     (2F, 2F)
                  row  p0+2F        attn_l  (feature heads | time heads)
                  row  p0+2F+1      attn_r
                  row  p0+2F+2      bias
    wih_ref   : (K, 3*GS)  GRU W_ih rows permuted to the kernel's flat-x
                layout (data | zero pad | per-node [feat|time]); columns
                gate-padded r|z|n at lane offsets 0, GS, 2*GS.
    whh_ref   : (H, 3*GS)  GRU W_hh^T, same gate-column padding.
    small_ref : (4, 3*GS)  row0 b_ih, row1 b_hh, row2 h0 (lanes 0:H),
                row3 data_r.flatten() (lanes 0:N*F, zero padded).
    hout_ref  : (1, H)     new hidden state (== GRU output for seq_len 1).
    xflat_ref : (1, K)     VMEM scratch holding the flattened GRU input.
    """
    two_f = gat_ref.shape[1]
    f = two_f // 2
    n_nodes = f + 1
    h = hout_ref.shape[1]
    gs = small_ref.shape[1] // 3
    p0 = _round_up(n_nodes, 8)
    nf = n_nodes * f
    nf_pad = _round_up(nf, 16)

    # ---- fused dual GAT (feature + time heads share every op) ---------------
    a_both = gat_ref[0:n_nodes, :]                         # (N, 2F)
    w_blk = gat_ref[p0:p0 + two_f, :]                      # (2F, 2F)
    attn_l = gat_ref[p0 + two_f:p0 + two_f + 1, :]         # (1, 2F)
    attn_r = gat_ref[p0 + two_f + 1:p0 + two_f + 2, :]
    bias = gat_ref[p0 + two_f + 2:p0 + two_f + 3, :]

    z = jnp.dot(a_both, w_blk, preferred_element_type=jnp.float32)    # (N, 2F)
    el = z * attn_l
    er0 = z[0:1, :] * attn_r                                           # dst node 0
    # Node 0 receives N incoming edges (the F star edges + its self-loop);
    # nodes 1..F only have their self-loop -> softmax weight 1 -> output z.
    e = jax.nn.leaky_relu(el + er0, negative_slope=0.2)                # (N, 2F)
    e = e - jnp.max(e, axis=0, keepdims=True)                          # stable softmax
    p = jnp.exp(e)
    alpha = p / jnp.sum(p, axis=0, keepdims=True)
    out0 = jnp.sum(alpha * z, axis=0, keepdims=True)                   # (1, 2F)
    rows = jax.lax.broadcasted_iota(jnp.int32, z.shape, 0)
    r_both = jnp.where(rows == 0, out0, z) + bias                      # (N, 2F)

    # ---- assemble the flat GRU input in VMEM (single fused projection) ------
    # Layout: [data_r.flatten() | zero pad to nf_pad | node0 [feat|time] |
    #          node1 ... | node N-1].  Every lane is written exactly once and
    # W_ih rows were permuted wrapper-side to this exact layout.
    xflat_ref[:, 0:nf_pad] = small_ref[3:4, 0:nf_pad]
    for n in range(n_nodes):
        off = nf_pad + n * two_f
        xflat_ref[:, off:off + two_f] = r_both[n:n + 1, :]

    # ---- single GRU step (PyTorch gate order r | z | n) ---------------------
    b_ih = small_ref[0:1, :]
    b_hh = small_ref[1:2, :]
    h0 = small_ref[2:3, 0:h]                                           # (1, H)

    gi = jnp.dot(xflat_ref[...], wih_ref[...],
                 preferred_element_type=jnp.float32) + b_ih            # (1, 3*GS)
    gh = jnp.dot(h0, whh_ref[...],
                 preferred_element_type=jnp.float32) + b_hh            # (1, 3*GS)

    r = _sigmoid(gi[:, 0:h] + gh[:, 0:h])
    zg = _sigmoid(gi[:, gs:gs + h] + gh[:, gs:gs + h])
    ng = jnp.tanh(gi[:, 2 * gs:2 * gs + h] + r * gh[:, 2 * gs:2 * gs + h])
    hout_ref[...] = (1.0 - zg) * ng + zg * h0


def mtad_gat_forward(data, hidden, params):
    """Mirrors MTAD_GAT.forward(data, hidden) -> (x.view(-1), h)."""
    feats = params["feature_gat"]["fc_w"].shape[0]
    n_window = feats
    n_hidden = feats * feats
    n_nodes = feats + 1
    two_f = 2 * feats
    gs = _round_up(n_hidden, 128)            # gate stride, 128-lane aligned
    p0 = _round_up(n_nodes, 8)
    nf = n_nodes * feats
    nf_pad = _round_up(nf, 16)
    k_flat = nf_pad + n_nodes * two_f        # flat GRU-input length (224 for F=8)

    data = data.reshape(n_window, feats).astype(jnp.float32)
    zrow = jnp.zeros((1, feats), jnp.float32)
    data_r = jnp.concatenate([zrow, data], axis=0)         # (N, F)
    data_tr = jnp.concatenate([zrow, data.T], axis=0)      # (N, F)

    # ---- GAT slab: [a_both | pad | blockdiag(Wf^T,Wt^T) | attn_l | attn_r | b]
    a_both = jnp.concatenate([data_r, data_tr], axis=1)    # (N, 2F)
    wf_t = params["feature_gat"]["fc_w"].T.astype(jnp.float32)
    wt_t = params["time_gat"]["fc_w"].T.astype(jnp.float32)
    zblk = jnp.zeros((feats, feats), jnp.float32)
    w_blk = jnp.concatenate(
        [jnp.concatenate([wf_t, zblk], axis=1),
         jnp.concatenate([zblk, wt_t], axis=1)], axis=0)   # (2F, 2F)

    def _pair(name):
        return jnp.concatenate(
            [params["feature_gat"][name].reshape(1, feats),
             params["time_gat"][name].reshape(1, feats)],
            axis=1).astype(jnp.float32)

    gat_slab = jnp.concatenate(
        [a_both,
         jnp.zeros((p0 - n_nodes, two_f), jnp.float32),
         w_blk, _pair("attn_l"), _pair("attn_r"), _pair("bias")], axis=0)

    # ---- GRU weights: permute W_ih rows to the kernel's flat-x layout, then
    #      pad gate columns to a 128-lane stride (r|z|n at 0, gs, 2*gs).
    # torch flat input index: i = n*3F + f*3 + comp  (comp 0=data,1=feat,2=time)
    w_ih_t = params["gru_w_ih"].T.astype(jnp.float32)      # (I, 3H)
    j_d = jnp.arange(nf)
    i_d = (j_d // feats) * (3 * feats) + (j_d % feats) * 3           # data rows
    j_r = jnp.arange(n_nodes * two_f)
    n_r = j_r // two_f
    c_r = j_r % two_f
    comp = jnp.where(c_r < feats, 1, 2)
    f_r = jnp.where(c_r < feats, c_r, c_r - feats)
    i_r = n_r * (3 * feats) + f_r * 3 + comp                         # [feat|time]
    w_ih_arr = jnp.concatenate(
        [jnp.take(w_ih_t, i_d, axis=0),
         jnp.zeros((nf_pad - nf, 3 * n_hidden), jnp.float32),
         jnp.take(w_ih_t, i_r, axis=0)], axis=0)                     # (k_flat, 3H)
    w_hh_t = params["gru_w_hh"].T.astype(jnp.float32)                # (H, 3H)

    def pad_gates(m):            # (..., 3H) -> (..., 3*gs)
        pad = jnp.zeros(m.shape[:-1] + (gs - n_hidden,), jnp.float32)
        return jnp.concatenate(
            [m[..., 0:n_hidden], pad,
             m[..., n_hidden:2 * n_hidden], pad,
             m[..., 2 * n_hidden:3 * n_hidden], pad], axis=-1)

    wih_slab = pad_gates(w_ih_arr)                                   # (k_flat, 3*gs)
    whh_slab = pad_gates(w_hh_t)                                     # (H, 3*gs)

    # ---- small slab: biases, h0, pre-flattened data --------------------------
    b_ih = pad_gates(params["gru_b_ih"].reshape(1, 3 * n_hidden).astype(jnp.float32))
    b_hh = pad_gates(params["gru_b_hh"].reshape(1, 3 * n_hidden).astype(jnp.float32))
    h0 = hidden.reshape(1, n_hidden).astype(jnp.float32)
    h0_row = jnp.pad(h0, ((0, 0), (0, 3 * gs - n_hidden)))
    data_row = jnp.pad(data_r.reshape(1, nf), ((0, 0), (0, 3 * gs - nf)))
    small_slab = jnp.concatenate([b_ih, b_hh, h0_row, data_row], axis=0)  # (4, 3*gs)

    flops = 2 * (n_nodes * two_f * two_f + k_flat * 3 * gs + n_hidden * 3 * gs)
    bytes_accessed = 4 * int(gat_slab.size + wih_slab.size + whh_slab.size
                             + small_slab.size + n_hidden)

    vmem = pl.BlockSpec(memory_space=pltpu.MemorySpace.VMEM)
    h_new = pl.pallas_call(
        mtad_gat_kernel,
        out_shape=jax.ShapeDtypeStruct((1, n_hidden), jnp.float32),
        in_specs=[vmem, vmem, vmem, vmem],
        out_specs=vmem,
        scratch_shapes=[pltpu.VMEM((1, k_flat), jnp.float32)],
        cost_estimate=pl.CostEstimate(
            flops=int(flops),
            transcendentals=int(n_nodes * two_f + 3 * n_hidden),
            bytes_accessed=bytes_accessed),
    )(gat_slab, wih_slab, whh_slab, small_slab)

    # GRU output for a length-1 sequence equals the new hidden state.
    return h_new.reshape(-1), h_new.reshape(1, 1, n_hidden)


def reference_forward(data, hidden, params):
    """Plain-JAX (XLA) reference of the same forward, for cross-checking."""
    feats = params["feature_gat"]["fc_w"].shape[0]
    n_hidden = feats * feats
    hp = jax.lax.Precision.HIGHEST
    data = data.reshape(feats, feats).astype(jnp.float32)
    zrow = jnp.zeros((1, feats), jnp.float32)
    data_r = jnp.concatenate([zrow, data], axis=0)
    data_tr = jnp.concatenate([zrow, data.T], axis=0)

    def gat(a, p):
        z = jnp.dot(a, p["fc_w"].T.astype(jnp.float32), precision=hp)   # (N, F)
        al = p["attn_l"].reshape(feats).astype(jnp.float32)
        ar = p["attn_r"].reshape(feats).astype(jnp.float32)
        e = jax.nn.leaky_relu(z * al + (z[0] * ar)[None, :], negative_slope=0.2)
        e = e - jnp.max(e, axis=0, keepdims=True)
        w = jnp.exp(e)
        alpha = w / jnp.sum(w, axis=0, keepdims=True)
        out0 = jnp.sum(alpha * z, axis=0)
        out = z.at[0].set(out0)
        return out + p["bias"].reshape(feats).astype(jnp.float32)

    feat_r = gat(data_r, params["feature_gat"])
    time_r = gat(data_tr, params["time_gat"])
    x = jnp.stack([data_r, feat_r, time_r], axis=2).reshape(-1)   # torch cat+view

    gi = jnp.dot(params["gru_w_ih"].astype(jnp.float32), x, precision=hp) \
        + params["gru_b_ih"].astype(jnp.float32)
    h0 = hidden.reshape(-1).astype(jnp.float32)
    gh = jnp.dot(params["gru_w_hh"].astype(jnp.float32), h0, precision=hp) \
        + params["gru_b_hh"].astype(jnp.float32)
    H = n_hidden
    r = jax.nn.sigmoid(gi[0:H] + gh[0:H])
    zg = jax.nn.sigmoid(gi[H:2 * H] + gh[H:2 * H])
    ng = jnp.tanh(gi[2 * H:3 * H] + r * gh[2 * H:3 * H])
    h_new = (1.0 - zg) * ng + zg * h0
    return h_new, h_new.reshape(1, 1, H)


def init_params(key, feats):
    """Deterministic synthetic parameters matching the torch module's shapes."""
    n_hidden = feats * feats
    in_sz = (feats + 1) * feats * 3
    ks = jax.random.split(key, 8)

    def uni(k, shape, bound):
        return jax.random.uniform(k, shape, jnp.float32, -bound, bound)

    def gat_params(k):
        kk = jax.random.split(k, 3)
        g = 1.0 / math.sqrt(feats)
        return {
            "fc_w":   uni(kk[0], (feats, feats), g),      # (heads*out, in)
            "attn_l": uni(kk[1], (1, feats, 1), g),
            "attn_r": uni(kk[2], (1, feats, 1), g),
            "bias":   jnp.zeros((feats,), jnp.float32),   # DGL GATConv bias init = 0
        }

    bg = 1.0 / math.sqrt(n_hidden)
    return {
        "feature_gat": gat_params(ks[0]),
        "time_gat":    gat_params(ks[1]),
        "gru_w_ih":    uni(ks[2], (3 * n_hidden, in_sz), bg),
        "gru_w_hh":    uni(ks[3], (3 * n_hidden, n_hidden), bg),
        "gru_b_ih":    uni(ks[4], (3 * n_hidden,), bg),
        "gru_b_hh":    uni(ks[5], (3 * n_hidden,), bg),
    }


if __name__ == "__main__":
    feats = 8                      # n_window = feats = 8, n_hidden = 64
    key = jax.random.PRNGKey(0)
    kd, kh, kp = jax.random.split(key, 3)

    data = jax.random.normal(kd, (feats, feats), jnp.float32)
    # The torch forward replaces a provided `hidden` with torch.rand(1,1,n_hidden);
    # we mirror the "hidden is not None" branch with a deterministic uniform draw
    # (f32 — TPU has no f64).
    hidden = jax.random.uniform(kh, (1, 1, feats * feats), jnp.float32)
    params = init_params(kp, feats)

    out, h = mtad_gat_forward(data, hidden, params)
    out = jax.block_until_ready(out)
    h = jax.block_until_ready(h)

    assert out.shape == (feats * feats,), out.shape
    assert h.shape == (1, 1, feats * feats), h.shape
    assert bool(jnp.all(jnp.isfinite(out)))

    # Cross-check the Pallas kernel against the plain-JAX reference forward.
    ref_out, _ = reference_forward(data, hidden, params)
    max_err = float(jnp.max(jnp.abs(out - ref_out)))
    assert max_err < 5e-2, max_err
    print("KERNEL_OK")
</pallas_src>

<mosaic_0001>
module attributes {stable_mosaic.version = 11 : i64} {
  func.func @mtad_gat_kernel(%arg0: memref<35x16xf32, #tpu.memory_space<vmem>>, %arg1: memref<224x384xf32, #tpu.memory_space<vmem>>, %arg2: memref<64x384xf32, #tpu.memory_space<vmem>>, %arg3: memref<4x384xf32, #tpu.memory_space<vmem>>, %arg4: memref<1x64xf32, #tpu.memory_space<vmem>>, %arg5: memref<1x224xf32, #tpu.memory_space<vmem>>) attributes {dimension_semantics = [], scalar_prefetch = 0 : i64, scratch_operands = 1 : i64, tpu.core_type = #tpu.core_type<tc>} {
    %c0 = arith.constant 0 : index
    %c0_0 = arith.constant 0 : index
    %0 = vector.load %arg0[%c0, %c0_0] : memref<35x16xf32, #tpu.memory_space<vmem>>, vector<9x16xf32>
    %c16 = arith.constant 16 : index
    %c0_1 = arith.constant 0 : index
    %1 = vector.load %arg0[%c16, %c0_1] : memref<35x16xf32, #tpu.memory_space<vmem>>, vector<16x16xf32>
    %c32 = arith.constant 32 : index
    %c0_2 = arith.constant 0 : index
    %2 = vector.load %arg0[%c32, %c0_2] : memref<35x16xf32, #tpu.memory_space<vmem>>, vector<1x16xf32>
    %c33 = arith.constant 33 : index
    %c0_3 = arith.constant 0 : index
    %3 = vector.load %arg0[%c33, %c0_3] : memref<35x16xf32, #tpu.memory_space<vmem>>, vector<1x16xf32>
    %c34 = arith.constant 34 : index
    %c0_4 = arith.constant 0 : index
    %4 = vector.load %arg0[%c34, %c0_4] : memref<35x16xf32, #tpu.memory_space<vmem>>, vector<1x16xf32>
    %cst = arith.constant dense<0.000000e+00> : vector<9x16xf32>
    %5 = tpu.matmul %0, %1, %cst {dimension_numbers = #tpu.dot_dimension_numbers<[1], [0], [0], [1], [0, 0, 1, 1], [], []>} : vector<9x16xf32>, vector<16x16xf32>, vector<9x16xf32> -> vector<9x16xf32>
    %6 = vector.broadcast %2 : vector<1x16xf32> to vector<9x16xf32>
    %7 = arith.mulf %5, %6 : vector<9x16xf32>
    %8 = vector.extract_strided_slice %5 {offsets = [0, 0], sizes = [1, 16], strides = [1, 1]} : vector<9x16xf32> to vector<1x16xf32>
    %9 = arith.mulf %8, %3 : vector<1x16xf32>
    %10 = vector.broadcast %9 : vector<1x16xf32> to vector<9x16xf32>
    %11 = arith.addf %7, %10 : vector<9x16xf32>
    %cst_5 = arith.constant 2.000000e-01 : f32
    %cst_6 = arith.constant 0.000000e+00 : f32
    %12 = vector.broadcast %cst_6 : f32 to vector<9x16xf32>
    %13 = arith.cmpf oge, %11, %12 : vector<9x16xf32>
    %14 = vector.broadcast %cst_5 : f32 to vector<9x16xf32>
    %15 = arith.mulf %14, %11 : vector<9x16xf32>
    %16 = arith.select %13, %11, %15 : vector<9x16xi1>, vector<9x16xf32>
    %cst_7 = arith.constant dense<0xFF800000> : vector<16xf32>
    %17 = vector.multi_reduction <maximumf>, %16, %cst_7 [0] : vector<9x16xf32> to vector<16xf32>
    %18 = vector.shape_cast %17 : vector<16xf32> to vector<1x16xf32>
    %19 = vector.broadcast %18 : vector<1x16xf32> to vector<9x16xf32>
    %20 = arith.subf %16, %19 : vector<9x16xf32>
    %21 = math.exp %20 : vector<9x16xf32>
    %cst_8 = arith.constant dense<0.000000e+00> : vector<16xf32>
    %22 = vector.multi_reduction <add>, %21, %cst_8 [0] : vector<9x16xf32> to vector<16xf32>
    %23 = vector.shape_cast %22 : vector<16xf32> to vector<1x16xf32>
    %24 = vector.broadcast %23 : vector<1x16xf32> to vector<9x16xf32>
    %25 = arith.divf %21, %24 : vector<9x16xf32>
    %26 = arith.mulf %25, %5 : vector<9x16xf32>
    %cst_9 = arith.constant dense<0.000000e+00> : vector<16xf32>
    %27 = vector.multi_reduction <add>, %26, %cst_9 [0] : vector<9x16xf32> to vector<16xf32>
    %28 = vector.shape_cast %27 : vector<16xf32> to vector<1x16xf32>
    %29 = tpu.iota {dimensions = array<i32: 0>} : vector<9x16xi32>
    %c0_i32 = arith.constant 0 : i32
    %30 = vector.broadcast %c0_i32 : i32 to vector<9x16xi32>
    %31 = arith.cmpi eq, %29, %30 : vector<9x16xi32>
    %32 = vector.shape_cast %28 : vector<1x16xf32> to vector<1x16xf32>
    %33 = vector.broadcast %32 : vector<1x16xf32> to vector<9x16xf32>
    %34 = arith.select %31, %33, %5 : vector<9x16xi1>, vector<9x16xf32>
    %35 = vector.broadcast %4 : vector<1x16xf32> to vector<9x16xf32>
    %36 = arith.addf %34, %35 : vector<9x16xf32>
    %c3 = arith.constant 3 : index
    %c0_10 = arith.constant 0 : index
    %37 = vector.load %arg3[%c3, %c0_10] : memref<4x384xf32, #tpu.memory_space<vmem>>, vector<1x80xf32>
    %c0_11 = arith.constant 0 : index
    %c0_12 = arith.constant 0 : index
    %38 = vector.load %arg5[%c0_11, %c0_12] : memref<1x224xf32, #tpu.memory_space<vmem>>, vector<1x80xf32>
    tpu.vector_store %arg5[%c0_11, %c0_12], %37 {strides = array<i32>} : memref<1x224xf32, #tpu.memory_space<vmem>>, vector<1x80xf32>,
    %39 = vector.extract_strided_slice %36 {offsets = [0, 0], sizes = [1, 16], strides = [1, 1]} : vector<9x16xf32> to vector<1x16xf32>
    %c0_13 = arith.constant 0 : index
    %c80 = arith.constant 80 : index
    %40 = vector.load %arg5[%c0_13, %c80] : memref<1x224xf32, #tpu.memory_space<vmem>>, vector<1x16xf32>
    tpu.vector_store %arg5[%c0_13, %c80], %39 {strides = array<i32>} : memref<1x224xf32, #tpu.memory_space<vmem>>, vector<1x16xf32>,
    %41 = vector.extract_strided_slice %36 {offsets = [1, 0], sizes = [1, 16], strides = [1, 1]} : vector<9x16xf32> to vector<1x16xf32>
    %c0_14 = arith.constant 0 : index
    %c96 = arith.constant 96 : index
    %42 = vector.load %arg5[%c0_14, %c96] : memref<1x224xf32, #tpu.memory_space<vmem>>, vector<1x16xf32>
    tpu.vector_store %arg5[%c0_14, %c96], %41 {strides = array<i32>} : memref<1x224xf32, #tpu.memory_space<vmem>>, vector<1x16xf32>,
    %43 = vector.extract_strided_slice %36 {offsets = [2, 0], sizes = [1, 16], strides = [1, 1]} : vector<9x16xf32> to vector<1x16xf32>
    %c0_15 = arith.constant 0 : index
    %c112 = arith.constant 112 : index
    %44 = vector.load %arg5[%c0_15, %c112] : memref<1x224xf32, #tpu.memory_space<vmem>>, vector<1x16xf32>
    tpu.vector_store %arg5[%c0_15, %c112], %43 {strides = array<i32>} : memref<1x224xf32, #tpu.memory_space<vmem>>, vector<1x16xf32>,
    %45 = vector.extract_strided_slice %36 {offsets = [3, 0], sizes = [1, 16], strides = [1, 1]} : vector<9x16xf32> to vector<1x16xf32>
    %c0_16 = arith.constant 0 : index
    %c128 = arith.constant 128 : index
    %46 = vector.load %arg5[%c0_16, %c128] : memref<1x224xf32, #tpu.memory_space<vmem>>, vector<1x16xf32>
    tpu.vector_store %arg5[%c0_16, %c128], %45 {strides = array<i32>} : memref<1x224xf32, #tpu.memory_space<vmem>>, vector<1x16xf32>,
    %47 = vector.extract_strided_slice %36 {offsets = [4, 0], sizes = [1, 16], strides = [1, 1]} : vector<9x16xf32> to vector<1x16xf32>
    %c0_17 = arith.constant 0 : index
    %c144 = arith.constant 144 : index
    %48 = vector.load %arg5[%c0_17, %c144] : memref<1x224xf32, #tpu.memory_space<vmem>>, vector<1x16xf32>
    tpu.vector_store %arg5[%c0_17, %c144], %47 {strides = array<i32>} : memref<1x224xf32, #tpu.memory_space<vmem>>, vector<1x16xf32>,
    %49 = vector.extract_strided_slice %36 {offsets = [5, 0], sizes = [1, 16], strides = [1, 1]} : vector<9x16xf32> to vector<1x16xf32>
    %c0_18 = arith.constant 0 : index
    %c160 = arith.constant 160 : index
    %50 = vector.load %arg5[%c0_18, %c160] : memref<1x224xf32, #tpu.memory_space<vmem>>, vector<1x16xf32>
    tpu.vector_store %arg5[%c0_18, %c160], %49 {strides = array<i32>} : memref<1x224xf32, #tpu.memory_space<vmem>>, vector<1x16xf32>,
    %51 = vector.extract_strided_slice %36 {offsets = [6, 0], sizes = [1, 16], strides = [1, 1]} : vector<9x16xf32> to vector<1x16xf32>
    %c0_19 = arith.constant 0 : index
    %c176 = arith.constant 176 : index
    %52 = vector.load %arg5[%c0_19, %c176] : memref<1x224xf32, #tpu.memory_space<vmem>>, vector<1x16xf32>
    tpu.vector_store %arg5[%c0_19, %c176], %51 {strides = array<i32>} : memref<1x224xf32, #tpu.memory_space<vmem>>, vector<1x16xf32>,
    %53 = vector.extract_strided_slice %36 {offsets = [7, 0], sizes = [1, 16], strides = [1, 1]} : vector<9x16xf32> to vector<1x16xf32>
    %c0_20 = arith.constant 0 : index
    %c192 = arith.constant 192 : index
    %54 = vector.load %arg5[%c0_20, %c192] : memref<1x224xf32, #tpu.memory_space<vmem>>, vector<1x16xf32>
    tpu.vector_store %arg5[%c0_20, %c192], %53 {strides = array<i32>} : memref<1x224xf32, #tpu.memory_space<vmem>>, vector<1x16xf32>,
    %55 = vector.extract_strided_slice %36 {offsets = [8, 0], sizes = [1, 16], strides = [1, 1]} : vector<9x16xf32> to vector<1x16xf32>
    %c0_21 = arith.constant 0 : index
    %c208 = arith.constant 208 : index
    %56 = vector.load %arg5[%c0_21, %c208] : memref<1x224xf32, #tpu.memory_space<vmem>>, vector<1x16xf32>
    tpu.vector_store %arg5[%c0_21, %c208], %55 {strides = array<i32>} : memref<1x224xf32, #tpu.memory_space<vmem>>, vector<1x16xf32>,
    %c0_22 = arith.constant 0 : index
    %c0_23 = arith.constant 0 : index
    %57 = vector.load %arg3[%c0_22, %c0_23] : memref<4x384xf32, #tpu.memory_space<vmem>>, vector<1x384xf32>
    %c1 = arith.constant 1 : index
    %c0_24 = arith.constant 0 : index
    %58 = vector.load %arg3[%c1, %c0_24] : memref<4x384xf32, #tpu.memory_space<vmem>>, vector<1x384xf32>
    %c2 = arith.constant 2 : index
    %c0_25 = arith.constant 0 : index
    %59 = vector.load %arg3[%c2, %c0_25] : memref<4x384xf32, #tpu.memory_space<vmem>>, vector<1x64xf32>
    %c0_26 = arith.constant 0 : index
    %c0_27 = arith.constant 0 : index
    %60 = vector.load %arg5[%c0_26, %c0_27] : memref<1x224xf32, #tpu.memory_space<vmem>>, vector<1x224xf32>
    %c0_28 = arith.constant 0 : index
    %c0_29 = arith.constant 0 : index
    %61 = vector.load %arg1[%c0_28, %c0_29] : memref<224x384xf32, #tpu.memory_space<vmem>>, vector<224x384xf32>
    %cst_30 = arith.constant dense<0.000000e+00> : vector<1x384xf32>
    %62 = tpu.matmul %60, %61, %cst_30 {dimension_numbers = #tpu.dot_dimension_numbers<[1], [0], [0], [1], [0, 0, 1, 1], [], []>} : vector<1x224xf32>, vector<224x384xf32>, vector<1x384xf32> -> vector<1x384xf32>
    %63 = arith.addf %62, %57 : vector<1x384xf32>
    %c0_31 = arith.constant 0 : index
    %c0_32 = arith.constant 0 : index
    %64 = vector.load %arg2[%c0_31, %c0_32] : memref<64x384xf32, #tpu.memory_space<vmem>>, vector<64x384xf32>
    %cst_33 = arith.constant dense<0.000000e+00> : vector<1x384xf32>
    %65 = tpu.matmul %59, %64, %cst_33 {dimension_numbers = #tpu.dot_dimension_numbers<[1], [0], [0], [1], [0, 0, 1, 1], [], []>} : vector<1x64xf32>, vector<64x384xf32>, vector<1x384xf32> -> vector<1x384xf32>
    %66 = arith.addf %65, %58 : vector<1x384xf32>
    %67 = vector.extract_strided_slice %63 {offsets = [0, 0], sizes = [1, 64], strides = [1, 1]} : vector<1x384xf32> to vector<1x64xf32>
    %68 = vector.extract_strided_slice %66 {offsets = [0, 0], sizes = [1, 64], strides = [1, 1]} : vector<1x384xf32> to vector<1x64xf32>
    %69 = arith.addf %67, %68 : vector<1x64xf32>
    %cst_34 = arith.constant 5.000000e-01 : f32
    %70 = vector.broadcast %cst_34 : f32 to vector<1x64xf32>
    %71 = arith.mulf %70, %69 : vector<1x64xf32>
    %72 = math.tanh %71 : vector<1x64xf32>
    %cst_35 = arith.constant 1.000000e+00 : f32
    %73 = vector.broadcast %cst_35 : f32 to vector<1x64xf32>
    %74 = arith.addf %72, %73 : vector<1x64xf32>
    %cst_36 = arith.constant 5.000000e-01 : f32
    %75 = vector.broadcast %cst_36 : f32 to vector<1x64xf32>
    %76 = arith.mulf %75, %74 : vector<1x64xf32>
    %77 = vector.extract_strided_slice %63 {offsets = [0, 128], sizes = [1, 64], strides = [1, 1]} : vector<1x384xf32> to vector<1x64xf32>
    %78 = vector.extract_strided_slice %66 {offsets = [0, 128], sizes = [1, 64], strides = [1, 1]} : vector<1x384xf32> to vector<1x64xf32>
    %79 = arith.addf %77, %78 : vector<1x64xf32>
    %cst_37 = arith.constant 5.000000e-01 : f32
    %80 = vector.broadcast %cst_37 : f32 to vector<1x64xf32>
    %81 = arith.mulf %80, %79 : vector<1x64xf32>
    %82 = math.tanh %81 : vector<1x64xf32>
    %cst_38 = arith.constant 1.000000e+00 : f32
    %83 = vector.broadcast %cst_38 : f32 to vector<1x64xf32>
    %84 = arith.addf %82, %83 : vector<1x64xf32>
    %cst_39 = arith.constant 5.000000e-01 : f32
    %85 = vector.broadcast %cst_39 : f32 to vector<1x64xf32>
    %86 = arith.mulf %85, %84 : vector<1x64xf32>
    %87 = vector.extract_strided_slice %63 {offsets = [0, 256], sizes = [1, 64], strides = [1, 1]} : vector<1x384xf32> to vector<1x64xf32>
    %88 = vector.extract_strided_slice %66 {offsets = [0, 256], sizes = [1, 64], strides = [1, 1]} : vector<1x384xf32> to vector<1x64xf32>
    %89 = arith.mulf %76, %88 : vector<1x64xf32>
    %90 = arith.addf %87, %89 : vector<1x64xf32>
    %91 = math.tanh %90 : vector<1x64xf32>
    %cst_40 = arith.constant 1.000000e+00 : f32
    %92 = vector.broadcast %cst_40 : f32 to vector<1x64xf32>
    %93 = arith.subf %92, %86 : vector<1x64xf32>
    %94 = arith.mulf %93, %91 : vector<1x64xf32>
    %95 = arith.mulf %86, %59 : vector<1x64xf32>
    %96 = arith.addf %94, %95 : vector<1x64xf32>
    %c0_41 = arith.constant 0 : index
    %c0_42 = arith.constant 0 : index
    %97 = vector.load %arg4[%c0_41, %c0_42] : memref<1x64xf32, #tpu.memory_space<vmem>>, vector<1x64xf32>
    tpu.vector_store %arg4[%c0_41, %c0_42], %96 {strides = array<i32>} : memref<1x64xf32, #tpu.memory_space<vmem>>, vector<1x64xf32>,
    return
  }
}

</mosaic_0001>

<bundles_post_ra>
// kernel: tpu_custom_call.1
= control target key start
LH: loop header
LB: loop body
LE: loop exit
PB: predicated region body
PF: predicated region fallthrough
CT: control target
= control target key end

     0   :  { %9 = vsyncpa [#allocation4], 0  ;;  %s913_s0 = inlined_call_operand.vmem [shape: f32[35,16], index: 0, kind: input, shape index: {}]   ;;  %s914_s1 = inlined_call_operand.hbm [shape: f32[224,384], index: 1, kind: input, shape index: {}]   ;;  %s915_s2 = inlined_call_operand.hbm [shape: f32[64,384], index: 2, kind: input, shape index: {}]   ;;  %s916_s3 = inlined_call_operand.vmem [shape: f32[4,384], index: 3, kind: input, shape index: {}]   ;;  %s917_s4 = inlined_call_operand.hbm [shape: f32[1,64], index: 4, kind: output, shape index: {}]  }
   0x1   :  { %10 = vsyncpa [#allocation7], 0 }
   0x2   :  { %11 = vsyncpa [#allocation5], 0  ;;  %s18_s17 = sshll.u32 %s914_s1, 4  ;;  %s715_s18 = smov [#allocation3]   ;;  %s19_s17 = int_to_ptr.hbm [resolvable:$true] %s18_s17 }
   0x3   :  { %s20_s19 = sshll.u32 %s715_s18, 4  ;;  %s31_s22 = sshll.u32 %s915_s2, 4  ;;  %s21_s19 = int_to_ptr.vmem [resolvable:$true] %s20_s19  ;;  %s32_s22 = int_to_ptr.hbm [resolvable:$true] %s31_s22 }
   0x4   :  { %s716_s23 = smov 384   ;;  %s717_s24 = smov 24  }
   0x5   :  { %26 = dma.hbm_to_vmem [thread:$0]  %s19_s17, 10752, %s21_s19, [#allocation4], %s716_s23, %s716_s23, %s717_s24  }
   0x6   :  { %s718_s25 = smov [#allocation6]  }
   0x7   :  { %s33_s26 = sshll.u32 %s718_s25, 4  ;;  %s34_s26 = int_to_ptr.vmem [resolvable:$true] %s33_s26 }
   0x8   :  { %39 = dma.hbm_to_vmem [thread:$0]  %s32_s22, 3072, %s34_s26, [#allocation7], %s716_s23, %s716_s23, %s717_s24  }
   0x9   :  { %709 = dma.done.wait [#allocation4], 10752  }
   0xa   :  { %710 = vsyncadd [#allocation4], 4294956544 }
   0xb   :  { %711 = dma.done.wait [#allocation7], 3072  }
   0xc   :  { %712 = vsyncadd [#allocation7], 4294964224  ;;  %v53_v0 = vld [vmem:[%s913_s0 + $0x18] sm:$0xff]  ;;  %v52_v1 = vld [vmem:[%s913_s0 + $0x10] sm:$0xff]  ;;  %vm57_vm0 = vcmask 130048   ;;  %vm101_vm3 = vcmask 122880   ;;  %v152_v60 = vlaneseq }
   0xd   :  { %78 = vmatpush.msra.mxu0 %v53_v0  ;;  %v50_v2 = vld [vmem:[%s913_s0] sm:$0xff]  ;;  %v51_v3 = vld [vmem:[%s913_s0 + $0x8] sm:$0x1]  ;;  %s719_s13 = smov 80   ;;  %s720_s14 = smov 96  }
   0xe   :  { %v55_v4 = vld [vmem:[%s913_s0 + $0x21] sm:$0x1]  ;;  %v623_v5 = vld [vmem:[%s913_s0 + $0x20] ss:$0 sm:$0xff]  ;;  %v153_v63 = vshrl.u32 %v152_v60, 7  ;;  %vm200_vm9 = vcmp.lt.s32.totalorder %v152_v60, 16 }
   0xf   :  { %79 = vmatpush.msra.mxu0 %v52_v1  ;;  %s721_s15 = smov 16   ;;  %s723_s16 = smov 112   ;;  %vm804_vm10 = vcmp.lt.s32.totalorder %v152_v60, 80  ;;  %vm811_vm11 = vcmp.ge.s32.totalorder %v152_v60, 80  ;;  %vm816_vm12 = vcmp.lt.s32.totalorder %v152_v60, 96  ;;  %vm821_vm13 = vcmp.ge.s32.totalorder %v152_v60, 96 }
  0x10   :  { %602 = vmatmul.msk.f32.vlgmr.msra.gmra.mxu0 %vm57_vm0, %v50_v2  ;;  %vm155_vm8 = vcmp.eq.s32.totalorder %v153_v63, 0  ;;  %s724_s17 = smov 48   ;;  %s725_s18 = smov 64   ;;  %vm183_vm14 = vcmp.lt.s32.totalorder %v152_v60, 112  ;;  %vm174_vm15 = vmand %vm811_vm11, %vm816_vm12  ;;  %v270_v63 = vld [vmem:[#allocation3 + $0x90] sm:$0xff]  ;;  %vm582_vm11 = vcmask 516096  }
  0x11   :  { %s591_s29 = sshll.u32 %s917_s4, 4  ;;  %s592_s29 = int_to_ptr.hbm [resolvable:$true] %s591_s29 }
  0x18   :  { %603 = vmatmul.msk.f32.gmra.mxu0 %vm57_vm0, %v51_v3  ;;  %v624_v3 = vld [vmem:[%s913_s0 + $0x22] ss:$0 sm:$0xff]  ;;  %s722_s0 = smov 32  }
  0x8d   :  { %v778_v6 = vpop.f32.mrf.mxu0 }
  0x8e   :  { %v90_v7 = vmul.f32 %v778_v6, %v55_v4  ;;  %v88_v9 = vmul.f32 %v623_v5, %v778_v6 }
  0x90   :  { %v91_v8 = vperm.slane %v90_v7, 0 }
  0x92   :  { %v92_v10 = vadd.f32 %v91_v8, %v88_v9 }
  0x94   :  { %v96_v13 = vmul.f32 0.2, %v92_v10  ;;  %vm94_vm1 = vcmp.ge.f32.partialorder %v92_v10, 0.0 }
  0x95   :  { %v782_v11 = vpop.f32.mrf.mxu0 }
  0x96   :  { %v89_v12 = vmul.f32 %v623_v5, %v782_v11  ;;  %v98_v16 = vsel %vm94_vm1, %v92_v10, %v96_v13  ;;  %v161_v13 = vadd.f32 %v624_v3, %v782_v11  ;;  %vm838_vm1 = vcmp.ge.s32.totalorder %v152_v60, 16 }
  0x97   :  { %v100_v18 = vsel %vm57_vm0, %v98_v16, -inf }
  0x98   :  { %v93_v14 = vadd.f32 %v91_v8, %v89_v12 }
  0x9a   :  { %vm95_vm2 = vcmp.ge.f32.partialorder %v93_v14, 0.0  ;;  %v97_v15 = vmul.f32 0.2, %v93_v14 }
  0x9c   :  { %v99_v17 = vsel %vm95_vm2, %v93_v14, %v97_v15  ;;  %v162_v15 = vld [vmem:[%s916_s3 + $0x3] sm:$0x1]  ;;  %vm843_vm2 = vcmp.lt.s32.totalorder %v152_v60, 32 }
  0x9d   :  { %v102_v19 = vsel %vm101_vm3, %v99_v17, -inf  ;;  %167 = vst.msk [vmem:[#allocation2] sm:$0x1] %vm804_vm10, %v162_v15  ;;  %v284_v15 = vld [vmem:[#allocation3 + $0x100] sm:$0xff] }
  0x9e   :  { %v103_v20 = vmax.f32 %v100_v18, %v102_v19  ;;  %v330_v18 = vld [vmem:[#allocation3 + $0x270] sm:$0xff]  ;;  %v297_v19 = vld [vmem:[#allocation3 + $0x168] sm:$0xff] }
  0x9f   :  { %350 = vmatpush.msra.mxu1 %v297_v19  ;;  %v281_v19 = vld [vmem:[#allocation3 + $0xe8] sm:$0xff] }
  0xa0   :  { %v104_v21 = vrot.slane %v103_v20, 4 }
  0xa2   :  { %v105_v22 = vmax.f32 %v103_v20, %v104_v21  ;;  %v298_v20 = vld [vmem:[#allocation3 + $0x170] sm:$0xff] }
  0xa3   :  { %v334_v21 = vld [vmem:[#allocation3 + $0x290] sm:$0xff]  ;;  %390 = vmatpush.msra.mxu3 %v298_v20  ;;  %v329_v20 = vld [vmem:[#allocation3 + $0x268] sm:$0xff] }
  0xa4   :  { %v106_v23 = vrot.slane %v105_v22, 2  ;;  %414 = vmatpush.msrb.mxu0 %v334_v21  ;;  %v255_v21 = vld [vmem:[#allocation3 + $0x18] sm:$0xff] }
  0xa6   :  { %v107_v24 = vmax.f32 %v105_v22, %v106_v23  ;;  %v294_v22 = vld [vmem:[#allocation3 + $0x150] sm:$0xff]  ;;  %v295_v23 = vld [vmem:[#allocation3 + $0x158] sm:$0xff] }
  0xa7   :  { %351 = vmatpush.msra.mxu1 %v294_v22  ;;  %391 = vmatpush.msra.mxu3 %v295_v23  ;;  %v256_v22 = vld [vmem:[#allocation3 + $0x20] sm:$0xff]  ;;  %v278_v23 = vld [vmem:[#allocation3 + $0xd0] sm:$0xff] }
  0xa8   :  { %v108_v25 = vrot.slane %v107_v24, 1 }
  0xaa   :  { %v109_v26 = vmax.f32 %v107_v24, %v108_v25  ;;  %v331_v24 = vld [vmem:[#allocation3 + $0x278] sm:$0xff]  ;;  %v324_v25 = vld [vmem:[#allocation3 + $0x240] sm:$0xff] }
  0xab   :  { %415 = vmatpush.msrb.mxu0 %v331_v24  ;;  %v326_v24 = vld [vmem:[#allocation3 + $0x250] sm:$0xff] }
  0xac   :  { %v110_v27 = vsub.f32 %v98_v16, %v109_v26  ;;  %v111_v28 = vsub.f32 %v99_v17, %v109_v26  ;;  %v333_v17 = vld [vmem:[#allocation3 + $0x288] sm:$0xff]  ;;  %v490_v16 = vld [vmem:[#allocation6 + $0xa0] sm:$0xff] }
  0xad   :  { %374 = vmatpush.msra.mxu2 %v333_v17  ;;  %v321_v26 = vld [vmem:[#allocation3 + $0x228] sm:$0xff]  ;;  %v332_v17 = vld [vmem:[#allocation3 + $0x280] sm:$0xff] }
  0xae   :  { %v112_v29 = vmul.f32 1.442695, %v110_v27  ;;  %v114_v30 = vmul.f32 1.442695, %v111_v28  ;;  %v318_v27 = vld [vmem:[#allocation3 + $0x210] sm:$0xff] }
  0xaf   :  { %375 = vmatpush.msra.mxu2 %v330_v18  ;;  %v258_v18 = vld [vmem:[#allocation3 + $0x30] sm:$0xff]  ;;  %v894_v28 = vld [vmem:[%s916_s3 + $0x2] sm:$0x1] }
  0xb0   :  { %625 = vpow2.f32 %v112_v29  ;;  %v484_v29 = vld [vmem:[#allocation6 + $0x70] sm:$0xff] }
  0xb1   :  { %627 = vpow2.f32 %v114_v30 }
  0xb6   :  { %v626_v31 = vpop.eup %625 }
  0xb7   :  { %v628_v32 = vpop.eup %627  ;;  %v116_v33 = vsel %vm57_vm0, %v626_v31, 0.0 }
  0xb8   :  { %v117_v34 = vsel %vm101_vm3, %v628_v32, 0.0 }
  0xb9   :  { %v118_v35 = vadd.f32 %v117_v34, %v116_v33  ;;  %v291_v33 = vld [vmem:[#allocation3 + $0x138] sm:$0xff] }
  0xba   :  { %v315_v34 = vld [vmem:[#allocation3 + $0x1f8] sm:$0xff]  ;;  %352 = vmatpush.msra.mxu1 %v291_v33  ;;  %v491_v33 = vld [vmem:[#allocation6 + $0xa8] sm:$0xff] }
  0xbb   :  { %v119_v36 = vrot.slane %v118_v35, 4 }
  0xbd   :  { %v120_v37 = vadd.f32 %v119_v36, %v118_v35  ;;  %v292_v35 = vld [vmem:[#allocation3 + $0x140] sm:$0xff] }
  0xbe   :  { %v328_v36 = vld [vmem:[#allocation3 + $0x260] sm:$0xff]  ;;  %392 = vmatpush.msra.mxu3 %v292_v35 }
  0xbf   :  { %v121_v38 = vrot.slane %v120_v37, 2  ;;  %416 = vmatpush.msrb.mxu0 %v328_v36  ;;  %v272_v35 = vld [vmem:[#allocation3 + $0xa0] sm:$0xff] }
  0xc0   :  { %v320_v36 = vld [vmem:[#allocation3 + $0x220] sm:$0xff] }
  0xc1   :  { %v122_v39 = vadd.f32 %v121_v38, %v120_v37  ;;  %v288_v37 = vld [vmem:[#allocation3 + $0x120] sm:$0xff] }
  0xc2   :  { %v312_v38 = vld [vmem:[#allocation3 + $0x1e0] sm:$0xff]  ;;  %353 = vmatpush.msra.mxu1 %v288_v37  ;;  %v488_v37 = vld [vmem:[#allocation6 + $0x90] sm:$0xff] }
  0xc3   :  { %v123_v40 = vrot.slane %v122_v39, 1 }
  0xc5   :  { %v124_v41 = vadd.f32 %v123_v40, %v122_v39  ;;  %v289_v39 = vld [vmem:[#allocation3 + $0x128] sm:$0xff] }
  0xc6   :  { %v325_v40 = vld [vmem:[#allocation3 + $0x248] sm:$0xff]  ;;  %393 = vmatpush.msra.mxu3 %v289_v39 }
  0xc7   :  { %629 = vrcp.f32 %v124_v41  ;;  %v136_v45 = vand.u32 2147483648, %v124_v41  ;;  %v134_v47 = vand.u32 2147483647, %v124_v41  ;;  %vm130_vm5 = vweird.f32 %v124_v41  ;;  %417 = vmatpush.msrb.mxu0 %v325_v40  ;;  %v269_v39 = vld [vmem:[#allocation3 + $0x88] sm:$0xff] }
  0xc8   :  { %v317_v40 = vld [vmem:[#allocation3 + $0x208] sm:$0xff] }
  0xc9   :  { %v137_v49 = vor.u32 1.1754944e-38, %v136_v45  ;;  %vm135_vm7 = vcmp.eq.f32.partialorder %v134_v47, 8.507059e+37  ;;  %v282_v45 = vld [vmem:[#allocation3 + $0xf0] sm:$0xff]  ;;  %v283_v47 = vld [vmem:[#allocation3 + $0xf8] sm:$0xff] }
  0xcd   :  { %v630_v42 = vpop.eup %629 }
  0xce   :  { %v126_v43 = vmul.f32 %v630_v42, %v124_v41  ;;  %vm131_vm4 = vweird.f32 %v630_v42  ;;  %v285_v41 = vld [vmem:[#allocation3 + $0x108] sm:$0xff] }
  0xcf   :  { %vm132_vm6 = vmor %vm130_vm5, %vm131_vm4  ;;  %354 = vmatpush.msra.mxu1 %v285_v41  ;;  %vm852_vm4 = vcmp.ge.s32.totalorder %v152_v60, 32  ;;  %vm857_vm5 = vcmp.lt.s32.totalorder %v152_v60, 48 }
  0xd0   :  { %v127_v44 = vsub.f32 1.0, %v126_v43  ;;  %v286_v43 = vld [vmem:[#allocation3 + $0x110] sm:$0xff] }
  0xd1   :  { %394 = vmatpush.msra.mxu3 %v286_v43  ;;  %355 = vmatpush.msra.mxu1 %v282_v45  ;;  %v486_v43 = vld [vmem:[#allocation6 + $0x80] sm:$0xff]  ;;  %v314_v45 = vld [vmem:[#allocation3 + $0x1f0] sm:$0xff] }
  0xd2   :  { %v128_v46 = vmul.f32 %v630_v42, %v127_v44  ;;  %v322_v44 = vld [vmem:[#allocation3 + $0x230] sm:$0xff] }
  0xd3   :  { %418 = vmatpush.msrb.mxu0 %v322_v44  ;;  %395 = vmatpush.msra.mxu3 %v283_v47  ;;  %v266_v44 = vld [vmem:[#allocation3 + $0x70] sm:$0xff]  ;;  %v483_v47 = vld [vmem:[#allocation6 + $0x68] sm:$0xff] }
  0xd4   :  { %v129_v48 = vadd.f32 %v630_v42, %v128_v46  ;;  %v306_v46 = vld [vmem:[#allocation3 + $0x1b0] sm:$0xff] }
  0xd6   :  { %v133_v50 = vsel %vm132_vm6, %v630_v42, %v129_v48  ;;  %v309_v42 = vld [vmem:[#allocation3 + $0x1c8] sm:$0xff]  ;;  %v319_v48 = vld [vmem:[#allocation3 + $0x218] sm:$0xff]  ;;  %vm221_vm6 = vmand %vm852_vm4, %vm857_vm5 }
  0xd7   :  { %v138_v51 = vsel %vm135_vm7, %v137_v49, %v133_v50  ;;  %419 = vmatpush.msrb.mxu0 %v319_v48  ;;  %v279_v49 = vld [vmem:[#allocation3 + $0xd8] sm:$0xff]  ;;  %vm866_vm7 = vcmp.ge.s32.totalorder %v152_v60, 112 }
  0xd8   :  { %v139_v52 = vmul.f32 %v626_v31, %v138_v51  ;;  %v140_v53 = vmul.f32 %v628_v32, %v138_v51  ;;  %v303_v50 = vld [vmem:[#allocation3 + $0x198] sm:$0xff]  ;;  %v280_v51 = vld [vmem:[#allocation3 + $0xe0] sm:$0xff]  ;;  %356 = vmatpush.msra.mxu1 %v279_v49 }
  0xd9   :  { %396 = vmatpush.msra.mxu3 %v280_v51  ;;  %v311_v51 = vld [vmem:[#allocation3 + $0x1d8] sm:$0xff] }
  0xda   :  { %v141_v54 = vmul.f32 %v139_v52, %v778_v6  ;;  %v142_v55 = vmul.f32 %v140_v53, %v782_v11  ;;  %v327_v11 = vld [vmem:[#allocation3 + $0x258] sm:$0xff]  ;;  %v316_v52 = vld [vmem:[#allocation3 + $0x200] sm:$0xff] }
  0xdb   :  { %376 = vmatpush.msra.mxu2 %v327_v11  ;;  %v276_v53 = vld [vmem:[#allocation3 + $0xc0] sm:$0xff]  ;;  %420 = vmatpush.msrb.mxu0 %v316_v52  ;;  %v259_v11 = vld [vmem:[#allocation3 + $0x38] sm:$0xff]  ;;  %v479_v52 = vld [vmem:[#allocation6 + $0x48] sm:$0xff] }
  0xdc   :  { %v143_v56 = vsel %vm57_vm0, %v141_v54, 0.0  ;;  %v144_v57 = vsel %vm101_vm3, %v142_v55, 0.0  ;;  %vm184_vm0 = vmand %vm821_vm13, %vm183_vm14  ;;  %v300_v54 = vld [vmem:[#allocation3 + $0x180] sm:$0xff]  ;;  %v277_v55 = vld [vmem:[#allocation3 + $0xc8] sm:$0xff]  ;;  %357 = vmatpush.msra.mxu1 %v276_v53  ;;  %vm230_vm13 = vcmp.lt.s32.totalorder %v152_v60, 64  ;;  %vm239_vm14 = vcmp.ge.s32.totalorder %v152_v60, 64 }
  0xdd   :  { %v145_v58 = vadd.f32 %v144_v57, %v143_v56  ;;  %377 = vmatpush.msra.mxu2 %v324_v25  ;;  %v313_v56 = vld [vmem:[#allocation3 + $0x1e8] sm:$0xff]  ;;  %v299_v57 = vld [vmem:[#allocation3 + $0x178] sm:$0xff]  ;;  %397 = vmatpush.msra.mxu3 %v277_v55  ;;  %v252_v25 = vld [vmem:[#allocation3] sm:$0xff] }
  0xde   :  { %421 = vmatpush.msrb.mxu0 %v313_v56  ;;  %vm211_vm3 = vmand %vm838_vm1, %vm843_vm2  ;;  %v480_v53 = vld [vmem:[#allocation6 + $0x50] sm:$0xff]  ;;  %v308_v55 = vld [vmem:[#allocation3 + $0x1c0] sm:$0xff] }
  0xdf   :  { %v146_v59 = vrot.slane %v145_v58, 4  ;;  %378 = vmatpush.msra.mxu2 %v321_v26  ;;  %v253_v26 = vld [vmem:[#allocation3 + $0x8] sm:$0xff]  ;;  %v476_v56 = vld [vmem:[#allocation6 + $0x30] sm:$0xff]  ;;  %vm240_vm2 = vmand %vm239_vm14, %vm804_vm10  ;;  %vm501_vm10 = vcmask 523264  }
  0xe1   :  { %v147_v61 = vadd.f32 %v146_v59, %v145_v58  ;;  %379 = vmatpush.msra.mxu2 %v318_v27  ;;  %v273_v58 = vld [vmem:[#allocation3 + $0xa8] sm:$0xff]  ;;  %v274_v59 = vld [vmem:[#allocation3 + $0xb0] sm:$0xff] }
  0xe2   :  { %358 = vmatpush.msra.mxu1 %v273_v58  ;;  %398 = vmatpush.msra.mxu3 %v274_v59  ;;  %v257_v58 = vld [vmem:[#allocation3 + $0x28] sm:$0xff] }
  0xe3   :  { %v148_v62 = vrot.slane %v147_v61, 2  ;;  %380 = vmatpush.msra.mxu2 %v315_v34  ;;  %v492_v34 = vld [vmem:[#allocation6 + $0xb0] sm:$0xff]  ;;  %v305_v59 = vld [vmem:[#allocation3 + $0x1a8] sm:$0xff] }
  0xe4   :  { %359 = vmatpush.msra.mxu1 %v270_v63  ;;  %v474_v63 = vld [vmem:[#allocation6 + $0x20] sm:$0xff] }
  0xe5   :  { %v149_v0 = vadd.f32 %v148_v62, %v147_v61  ;;  %381 = vmatpush.msra.mxu2 %v312_v38  ;;  %v310_v61 = vld [vmem:[#allocation3 + $0x1d0] sm:$0xff]  ;;  %v296_v62 = vld [vmem:[#allocation3 + $0x160] sm:$0xff]  ;;  %v489_v38 = vld [vmem:[#allocation6 + $0x98] sm:$0xff] }
  0xe6   :  { %422 = vmatpush.msrb.mxu0 %v310_v61 }
  0xe7   :  { %v150_v1 = vrot.slane %v149_v0, 1  ;;  %382 = vmatpush.msra.mxu2 %v309_v42  ;;  %v485_v42 = vld [vmem:[#allocation6 + $0x78] sm:$0xff] }
  0xe9   :  { %v151_v2 = vadd.f32 %v150_v1, %v149_v0  ;;  %383 = vmatpush.msra.mxu2 %v306_v46  ;;  %v271_v0 = vld [vmem:[#allocation3 + $0x98] sm:$0xff]  ;;  %v482_v46 = vld [vmem:[#allocation6 + $0x60] sm:$0xff] }
  0xea   :  { %v307_v1 = vld [vmem:[#allocation3 + $0x1b8] sm:$0xff]  ;;  %399 = vmatpush.msra.mxu3 %v271_v0  ;;  %v254_v0 = vld [vmem:[#allocation3 + $0x10] sm:$0xff] }
  0xeb   :  { %v157_v4 = vsel %vm155_vm8, %v151_v2, %v778_v6  ;;  %384 = vmatpush.msra.mxu2 %v303_v50  ;;  %v293_v2 = vld [vmem:[#allocation3 + $0x148] sm:$0xff]  ;;  %423 = vmatpush.msrb.mxu0 %v307_v1  ;;  %v263_v50 = vld [vmem:[#allocation3 + $0x58] sm:$0xff]  ;;  %v302_v1 = vld [vmem:[#allocation3 + $0x190] sm:$0xff]  ;;  %vm871_vm8 = vcmp.lt.s32.totalorder %v152_v60, 128 }
  0xec   :  { %v160_v5 = vadd.f32 %v624_v3, %v157_v4  ;;  %v267_v3 = vld [vmem:[#allocation3 + $0x78] sm:$0xff]  ;;  %v268_v4 = vld [vmem:[#allocation3 + $0x80] sm:$0xff] }
  0xed   :  { %385 = vmatpush.msra.mxu2 %v300_v54  ;;  %360 = vmatpush.msra.mxu1 %v267_v3  ;;  %v260_v54 = vld [vmem:[#allocation3 + $0x40] sm:$0xff]  ;;  %v471_v3 = vld [vmem:[#allocation6 + $0x8] sm:$0xff] }
  0xee   :  { %176 = vst [vmem:[#allocation1] sm:$0xff] %v160_v5  ;;  %169 = vrot.lane.b32.xlu1 %v160_v5, %s719_s13  ;;  %400 = vmatpush.msra.mxu3 %v268_v4 }
  0xef   :  { %430 = vmatpush.msrb.mxu2 %v299_v57  ;;  %v477_v57 = vld [vmem:[#allocation6 + $0x38] sm:$0xff] }
  0xf1   :  { %431 = vmatpush.msrb.mxu2 %v296_v62  ;;  %v473_v62 = vld [vmem:[#allocation6 + $0x18] sm:$0xff] }
  0xf3   :  { %432 = vmatpush.msrb.mxu2 %v293_v2  ;;  %v470_v2 = vld [vmem:[#allocation6] sm:$0xff] }
  0xf5   :  { %v178_v7 = vld [vmem:[#allocation1 + $0x1] ss:$9 sm:$0xff] }
  0xf6   :  { %179 = vrot.lane.b32.xlu2 %v178_v7, %s720_s14  ;;  %186 = vst [vmem:[#allocation1] sm:$0xff] %v160_v5  ;;  %v290_v7 = vld [vmem:[#allocation3 + $0x130] sm:$0xff] }
  0xf7   :  { %433 = vmatpush.msrb.mxu2 %v290_v7 }
  0xfd   :  { %v188_v8 = vld [vmem:[#allocation1 + $0x2] ss:$9 sm:$0xff] }
  0xfe   :  { %196 = vst [vmem:[#allocation1] sm:$0xff] %v160_v5 }
 0x105   :  { %v198_v9 = vld [vmem:[#allocation1 + $0x3] ss:$9 sm:$0xff] }
 0x106   :  { %203 = vst [vmem:[#allocation1] sm:$0xff] %v160_v5 }
 0x107   :  { %202 = vst.msk [vmem:[#allocation2 + $0x1] sm:$0x1] %vm200_vm9, %v198_v9  ;;  %v265_v9 = vld [vmem:[#allocation3 + $0x68] sm:$0xff]  ;;  %vm229_vm9 = vcmp.ge.s32.totalorder %v152_v60, 48 }
 0x108   :  { %401 = vmatpush.msra.mxu3 %v265_v9  ;;  %vm231_vm1 = vmand %vm229_vm9, %vm230_vm13 }
 0x10d   :  { %v205_v10 = vld [vmem:[#allocation1 + $0x4] ss:$9 sm:$0xff] }
 0x10e   :  { %206 = vrot.lane.b32.xlu0 %v205_v10, %s721_s15  ;;  %213 = vst [vmem:[#allocation1] sm:$0xff] %v160_v5  ;;  %v301_v10 = vld [vmem:[#allocation3 + $0x188] sm:$0xff] }
 0x115   :  { %v215_v6 = vld [vmem:[#allocation1 + $0x5] ss:$9 sm:$0xff] }
 0x116   :  { %216 = vrot.lane.b32.xlu0 %v215_v6, %s722_s0  ;;  %223 = vst [vmem:[#allocation1] sm:$0xff] %v160_v5  ;;  %v287_v6 = vld [vmem:[#allocation3 + $0x118] sm:$0xff] }
 0x117   :  { %434 = vmatpush.msrb.mxu2 %v287_v6 }
 0x119   :  { %435 = vmatpush.msrb.mxu2 %v284_v15  ;;  %v481_v15 = vld [vmem:[#allocation6 + $0x58] sm:$0xff] }
 0x11b   :  { %436 = vmatpush.msrb.mxu2 %v281_v19  ;;  %v247_v19 = vld [vmem:[%s916_s3] ss:$4 sm:$0x7] }
 0x11c   :  { %v342_v27 = vperm.slane %v247_v19, 1 }
 0x11d   :  { %v225_v12 = vld [vmem:[#allocation1 + $0x6] ss:$9 sm:$0xff]  ;;  %437 = vmatpush.msrb.mxu2 %v278_v23 }
 0x11e   :  { %189 = vrot.lane.b32.xlu0 %v188_v8, %s723_s16  ;;  %226 = vrot.lane.b32.xlu1 %v225_v12, %s724_s17  ;;  %233 = vst [vmem:[#allocation1] sm:$0xff] %v160_v5  ;;  %v304_v5 = vld [vmem:[#allocation3 + $0x1a0] sm:$0xff]  ;;  %v335_v12 = vld [vmem:[#allocation3 + $0x298] sm:$0xff] }
 0x11f   :  { %424 = vmatpush.msrb.mxu0 %v304_v5  ;;  %v264_v8 = vld [vmem:[#allocation3 + $0x60] sm:$0xff] }
 0x120   :  { %361 = vmatpush.msra.mxu1 %v264_v8 }
 0x121   :  { %425 = vmatpush.msrb.mxu0 %v301_v10 }
 0x123   :  { %454 = vmatpush.msra.mxu0 %v335_v12 }
 0x125   :  { %v235_v14 = vld [vmem:[#allocation1 + $0x7] ss:$9 sm:$0xff]  ;;  %455 = vmatpush.msra.mxu0 %v332_v17 }
 0x126   :  { %243 = vrot.lane.b32.xlu1 %v161_v13, %s719_s13  ;;  %236 = vrot.lane.b32.xlu2 %v235_v14, %s725_s18  ;;  %v261_v13 = vld [vmem:[#allocation3 + $0x48] sm:$0xff]  ;;  %v262_v14 = vld [vmem:[#allocation3 + $0x50] sm:$0xff]  ;;  %v478_v17 = vld [vmem:[#allocation6 + $0x40] sm:$0xff] }
 0x127   :  { %362 = vmatpush.msra.mxu1 %v261_v13  ;;  %402 = vmatpush.msra.mxu3 %v262_v14  ;;  %v493_v13 = vld [vmem:[#allocation6 + $0xb8] sm:$0xff]  ;;  %v487_v14 = vld [vmem:[#allocation6 + $0x88] sm:$0xff] }
 0x128   :  { %456 = vmatpush.msra.mxu0 %v329_v20 }
 0x129   :  { %363 = vmatpush.msra.mxu1 %v258_v18  ;;  %403 = vmatpush.msra.mxu3 %v259_v11  ;;  %v475_v18 = vld [vmem:[#allocation6 + $0x28] sm:$0xff]  ;;  %v472_v11 = vld [vmem:[#allocation6 + $0x10] sm:$0xff] }
 0x12a   :  { %457 = vmatpush.msra.mxu0 %v326_v24 }
 0x12b   :  { %364 = vmatpush.msra.mxu1 %v255_v21  ;;  %404 = vmatpush.msra.mxu3 %v256_v22  ;;  %v604_v21 = vld [vmem:[%s916_s3 + $0x1] ss:$4 sm:$0x7]  ;;  %v341_v22 = vperm.slane %v247_v19, 0  ;;  %s726_s3 = smov [#allocation8]  }
 0x12c   :  { %v495_v23 = vperm.slane %v604_v21, 0  ;;  %s589_s1 = sshll.u32 %s726_s3, 4  ;;  %s590_s1 = int_to_ptr.vmem [resolvable:$true] %s589_s1 }
 0x12d   :  { %365 = vmatpush.msra.mxu1 %v252_v25  ;;  %405 = vmatpush.msra.mxu3 %v253_v26 }
 0x12f   :  { %513 = vmatpush.msrb.mxu1 %v491_v33  ;;  %533 = vmatpush.msrb.mxu3 %v492_v34 }
 0x131   :  { %514 = vmatpush.msrb.mxu1 %v488_v37  ;;  %534 = vmatpush.msrb.mxu3 %v489_v38 }
 0x133   :  { %515 = vmatpush.msrb.mxu1 %v485_v42  ;;  %535 = vmatpush.msrb.mxu3 %v486_v43  ;;  %v497_v43 = vperm.slane %v604_v21, 2 }
 0x135   :  { %516 = vmatpush.msrb.mxu1 %v482_v46  ;;  %536 = vmatpush.msrb.mxu3 %v483_v47 }
 0x137   :  { %517 = vmatpush.msrb.mxu1 %v479_v52  ;;  %537 = vmatpush.msrb.mxu3 %v480_v53 }
 0x139   :  { %518 = vmatpush.msrb.mxu1 %v476_v56  ;;  %538 = vmatpush.msrb.mxu3 %v477_v57 }
 0x13b   :  { %519 = vmatpush.msrb.mxu1 %v473_v62  ;;  %539 = vmatpush.msrb.mxu3 %v474_v63 }
 0x13d   :  { %520 = vmatpush.msrb.mxu1 %v470_v2  ;;  %540 = vmatpush.msrb.mxu3 %v471_v3 }
 0x150   :  { %v180_v32 = vpop.permute.xlu2 %179 }
 0x160   :  { %v170_v31 = vpop.permute.xlu1 %169 }
 0x161   :  { %175 = vst.msk [vmem:[#allocation2] sm:$0x1] %vm174_vm15, %v170_v31  ;;  %v275_v31 = vld [vmem:[#allocation3 + $0xb8] sm:$0xff] }
 0x162   :  { %185 = vst.msk [vmem:[#allocation2] sm:$0x1] %vm184_vm0, %v180_v32  ;;  %v323_v32 = vld [vmem:[#allocation3 + $0x238] sm:$0xff]  ;;  %438 = vmatpush.msrb.mxu2 %v275_v31  ;;  %vm194_vm0 = vmand %vm866_vm7, %vm871_vm8 }
 0x163   :  { %458 = vmatpush.msra.mxu0 %v323_v32 }
 0x164   :  { %439 = vmatpush.msrb.mxu2 %v272_v35  ;;  %v496_v35 = vperm.slane %v604_v21, 1 }
 0x165   :  { %459 = vmatpush.msra.mxu0 %v320_v36 }
 0x166   :  { %440 = vmatpush.msrb.mxu2 %v269_v39 }
 0x167   :  { %460 = vmatpush.msra.mxu0 %v317_v40 }
 0x168   :  { %441 = vmatpush.msrb.mxu2 %v266_v44 }
 0x169   :  { %461 = vmatpush.msra.mxu0 %v314_v45 }
 0x16a   :  { %442 = vmatpush.msrb.mxu2 %v263_v50 }
 0x16b   :  { %462 = vmatpush.msra.mxu0 %v311_v51 }
 0x16c   :  { %443 = vmatpush.msrb.mxu2 %v260_v54 }
 0x16d   :  { %463 = vmatpush.msra.mxu0 %v308_v55 }
 0x16e   :  { %444 = vmatpush.msrb.mxu2 %v257_v58 }
 0x16f   :  { %464 = vmatpush.msra.mxu0 %v305_v59 }
 0x170   :  { %445 = vmatpush.msrb.mxu2 %v254_v0 }
 0x171   :  { %465 = vmatpush.msra.mxu0 %v302_v1 }
 0x180   :  { %v207_v41 = vpop.permute.xlu0 %206  ;;  %v237_v9 = vpop.permute.xlu2 %236 }
 0x181   :  { %212 = vst.msk [vmem:[#allocation2 + $0x1] sm:$0x1] %vm211_vm3, %v207_v41  ;;  %vm347_vm3 = vcmask 785408   ;;  %v343_v41 = vperm.slane %v247_v19, 2 }
 0x188   :  { %v217_v61 = vpop.permute.xlu0 %216 }
 0x189   :  { %222 = vst.msk [vmem:[#allocation2 + $0x1] sm:$0x1] %vm221_vm6, %v217_v61 }
 0x190   :  { %v190_v7 = vpop.permute.xlu0 %189  ;;  %v227_v8 = vpop.permute.xlu1 %226 }
 0x191   :  { %195 = vst.msk [vmem:[#allocation2] sm:$0x1] %vm194_vm0, %v190_v7 }
 0x192   :  { %232 = vst.msk [vmem:[#allocation2 + $0x1] sm:$0x1] %vm231_vm1, %v227_v8 }
 0x193   :  { %241 = vst.msk [vmem:[#allocation2 + $0x1] sm:$0x1] %vm240_vm2, %v237_v9 }
 0x198   :  { %v244_v10 = vpop.permute.xlu1 %243 }
 0x199   :  { %246 = vst.msk [vmem:[#allocation2 + $0x1] sm:$0x1] %vm174_vm15, %v244_v10 }
 0x1a0   :  { %v251_v60 = vld [vmem:[#allocation2] sm:$0x3] }
 0x1a1   :  { %v337_v6 = vperm.slane %v251_v60, 0  ;;  %v338_v12 = vperm.slane %v251_v60, 1 }
 0x1a3   :  { %366 = vmatmul.f32.vlgmr.msra.gmra.mxu1 %v337_v6  ;;  %605 = vmatmul.msk.f32.vlgmr.msra.gmra.mxu2 %vm347_vm3, %v338_v12 }
 0x1a4   :  { %406 = vmatmul.f32.vlgmr.msra.gmra.mxu3 %v337_v6  ;;  %606 = vmatmul.msk.f32.vlgmr.msrb.gmra.mxu0 %vm347_vm3, %v338_v12 }
 0x1a5   :  { %553 = vmatpush.msra.mxu1 %v493_v13 }
 0x1a7   :  { %554 = vmatpush.msra.mxu1 %v490_v16 }
 0x1a9   :  { %555 = vmatpush.msra.mxu1 %v487_v14 }
 0x1ab   :  { %446 = vmatmul.f32.vlgmr.msrb.gmra.mxu2 %v337_v6  ;;  %608 = vmatmul.msk.f32.vlgmr.msrb.gmra.mxu1 %vm501_vm10, %v894_v28 }
 0x1ac   :  { %607 = vmatmul.msk.f32.vlgmr.msra.gmra.mxu0 %vm347_vm3, %v338_v12  ;;  %609 = vmatmul.msk.f32.vlgmr.msrb.gmra.mxu3 %vm501_vm10, %v894_v28 }
 0x1ad   :  { %556 = vmatpush.msra.mxu1 %v484_v29 }
 0x1af   :  { %557 = vmatpush.msra.mxu1 %v481_v15 }
 0x1b1   :  { %558 = vmatpush.msra.mxu1 %v478_v17 }
 0x1b3   :  { %559 = vmatpush.msra.mxu1 %v475_v18 }
 0x1b5   :  { %560 = vmatpush.msra.mxu1 %v472_v11 }
 0x1b6   :  { %610 = vmatmul.msk.f32.vlgmr.msra.gmra.mxu1 %vm501_vm10, %v894_v28 }
 0x220   :  { %v367_v20 = vpop.f32.mrf.mxu1 }
 0x221   :  { %v368_v25 = vadd.f32 %v367_v20, %v341_v22  ;;  %v427_v37 = vpop.f32.mrf.mxu0 }
 0x226   :  { %v387_v24 = vpop.f32.mrf.mxu2 }
 0x227   :  { %v407_v26 = vpop.f32.mrf.mxu3  ;;  %v388_v31 = vadd.f32 %v387_v24, %v368_v25 }
 0x228   :  { %v522_v30 = vpop.f32.mrf.mxu1  ;;  %v408_v34 = vadd.f32 %v407_v26, %v342_v27 }
 0x229   :  { %v523_v32 = vadd.f32 %v522_v30, %v495_v23  ;;  %v467_v52 = vpop.f32.mrf.mxu0 }
 0x22a   :  { %v428_v39 = vadd.f32 %v427_v37, %v408_v34 }
 0x22b   :  { %v565_v33 = vadd.f32 %v523_v32, %v388_v31 }
 0x22d   :  { %v566_v36 = vmul.f32 0.5, %v565_v33 }
 0x22e   :  { %v447_v44 = vpop.f32.mrf.mxu2 }
 0x22f   :  { %631 = vtanh.f32 %v566_v36  ;;  %v542_v38 = vpop.f32.mrf.mxu3  ;;  %v448_v48 = vadd.f32 %v447_v44, %v343_v41 }
 0x230   :  { %v543_v40 = vadd.f32 %v542_v38, %v496_v35 }
 0x231   :  { %v468_v53 = vadd.f32 %v467_v52, %v448_v48 }
 0x232   :  { %v570_v42 = vadd.f32 %v543_v40, %v428_v39 }
 0x233   :  { %v562_v45 = vpop.f32.mrf.mxu1 }
 0x234   :  { %v571_v46 = vmul.f32 0.5, %v570_v42  ;;  %v563_v49 = vadd.f32 %v562_v45, %v497_v43 }
 0x235   :  { %v632_v47 = vpop.eup %631 }
 0x236   :  { %633 = vtanh.f32 %v571_v46  ;;  %v568_v50 = vadd.f32 1.0, %v632_v47 }
 0x238   :  { %v569_v51 = vmul.f32 0.5, %v568_v50 }
 0x23a   :  { %v575_v54 = vmul.f32 %v569_v51, %v563_v49 }
 0x23c   :  { %v634_v55 = vpop.eup %633  ;;  %v576_v56 = vadd.f32 %v575_v54, %v468_v53 }
 0x23d   :  { %v573_v57 = vadd.f32 1.0, %v634_v55 }
 0x23e   :  { %635 = vtanh.f32 %v576_v56 }
 0x23f   :  { %v574_v58 = vmul.f32 0.5, %v573_v57 }
 0x241   :  { %v578_v59 = vsub.f32 1.0, %v574_v58  ;;  %v580_v62 = vmul.f32 %v574_v58, %v894_v28 }
 0x244   :  { %v636_v61 = vpop.eup %635 }
 0x245   :  { %v579_v63 = vmul.f32 %v636_v61, %v578_v59 }
 0x247   :  { %v581_v0 = vadd.f32 %v580_v62, %v579_v63 }
 0x249   :  { %583 = vst.msk [vmem:[#allocation8] sm:$0x1] %vm582_vm11, %v581_v0 }
 0x24a   :  { %594 = dma.vmem_to_hbm [thread:$0]  %s590_s1, 16, %s592_s29, [#allocation5]  }
 0x24b   :  { %713 = dma.done.wait [#allocation5], 16  }
 0x24c   :  { %714 = vsyncadd [#allocation5], 4294967280 }
 0x24d   :  { %599 = vsyncpa [#allocation4], 1 }
 0x24e   :  { %600 = vsyncpa [#allocation7], 1 }
 0x24f   :  { %601 = vsyncpa [#allocation5], 1 }

</bundles_post_ra>
